<compile_context>
chip_gen: v6e
topology: v6e:2x2x1
jax: 0.10.0
libtpu: 0.0.40
codegen_flags: <defaults>
</compile_context>

<pallas_src>
import jax
import jax.numpy as jnp
from jax.experimental import pallas as pl
from jax.experimental.pallas import tpu as pltpu

_MiB = 1024 * 1024
_LANE_CANDIDATES = (4096, 2048, 1024, 512, 256, 128)


def _swish_kernel(x_ref, o_ref):
    xf = x_ref[...].astype(jnp.float32)
    # swish(x) = x * sigmoid(x) = 0.5 * x * (1 + tanh(x/2)).
    # Single EUP op (tanh) per vreg; the extra muls ride the 4-wide VALU.
    o_ref[...] = (0.5 * xf * (1.0 + jnp.tanh(0.5 * xf))).astype(o_ref.dtype)


def _sublane_multiple(dtype):
    # packed-layout friendly row multiples: f32 -> 8, bf16 -> 16, int8/fp8 -> 32
    return {4: 8, 2: 16, 1: 32}.get(jnp.dtype(dtype).itemsize, 8)


def _hw_params():
    """(vmem_capacity_bytes, num_tensorcores) with conservative fallbacks."""
    vmem = 128 * _MiB
    cores = 1
    try:
        info = pltpu.get_tpu_info()
        vmem = int(getattr(info, "vmem_capacity_bytes", vmem))
        found = False
        for name in ("num_cores", "core_count", "num_tensorcores", "tensorcore_count"):
            v = getattr(info, name, None)
            if isinstance(v, int) and v > 0:
                cores, found = v, True
                break
        if not found and vmem <= 64 * _MiB:
            # v7x is the only generation with 64 MiB VMEM per TC (and 2 TCs).
            cores = 2
    except Exception:
        pass  # interpret mode / non-TPU backend: conservative single-core defaults
    return vmem, cores


def _pick_width(n, sub, cores):
    """Widest lane count dividing n whose row count keeps sublanes dense."""
    min_rows = sub * (2 if cores > 1 else 1)
    for w in _LANE_CANDIDATES:
        if n % w == 0 and n // w >= min_rows:
            return w
    for w in _LANE_CANDIDATES:
        if n % w == 0:
            return w
    return None


def _swish_2d(x2d, vmem_capacity, cores):
    rows, width = x2d.shape
    dtype = x2d.dtype
    itemsize = jnp.dtype(dtype).itemsize
    sub = _sublane_multiple(dtype)

    # ~6 MiB tiles on 64 MiB-VMEM parts (v7x), ~12 MiB on 128 MiB parts.
    target_tile_bytes = 6 * _MiB if vmem_capacity <= 64 * _MiB else 12 * _MiB

    target_rows = max(sub, (target_tile_bytes // (width * itemsize)) // sub * sub)
    tile_rows = min(rows, target_rows)

    # Megacore split: only when there is more than one TensorCore (v7x), and
    # aim for >= 2 blocks per core so each core's pipeline double-buffers.
    if cores > 1 and tile_rows == rows and rows >= 2 * cores * sub:
        per = pl.cdiv(rows, 2 * cores)
        tile_rows = ((per + sub - 1) // sub) * sub
    # TODO(synk): make the v7x 2-core sharding explicit via pltpu.CORE_PARALLEL
    # (leading grid axis sized to the core count) or pl.core_map instead of
    # relying on plain "parallel" semantics.

    tile_bytes = tile_rows * width * itemsize
    # 2 arrays (in + out) x 2 pipeline buffers x tile, plus margin.
    vmem_limit = 4 * tile_bytes + 4 * _MiB

    grid = (pl.cdiv(rows, tile_rows),)
    return pl.pallas_call(
        _swish_kernel,
        out_shape=jax.ShapeDtypeStruct((rows, width), dtype),
        grid_spec=pltpu.PrefetchScalarGridSpec(
            num_scalar_prefetch=0,
            grid=grid,
            in_specs=[pl.BlockSpec((tile_rows, width), lambda i: (i, 0))],
            out_specs=pl.BlockSpec((tile_rows, width), lambda i: (i, 0)),
        ),
        compiler_params=pltpu.CompilerParams(
            dimension_semantics=("parallel",),
            vmem_limit_bytes=vmem_limit,
        ),
    )(x2d)


def swish(x):
    """Elementwise swish: x * sigmoid(x). Works for any input shape/dtype."""
    orig_shape = x.shape
    n = x.size
    if n == 0:
        return x

    vmem_capacity, cores = _hw_params()
    sub = _sublane_multiple(x.dtype)
    x_flat = jnp.ravel(x)

    width = _pick_width(n, sub, cores)
    if width is not None:
        # Common case: pure reshapes (free), no padding / slicing HBM copies.
        out2d = _swish_2d(x_flat.reshape(n // width, width), vmem_capacity, cores)
        return out2d.reshape(orig_shape)

    # Ragged fallback: size not a multiple of 128.  Kernel handles the
    # 128-aligned prefix; the (<128 element) tail is done in plain jnp.
    n_aligned = (n // 128) * 128
    tail32 = x_flat[n_aligned:].astype(jnp.float32)
    tail_out = (0.5 * tail32 * (1.0 + jnp.tanh(0.5 * tail32))).astype(x.dtype)
    if n_aligned == 0:
        return tail_out.reshape(orig_shape)
    w = _pick_width(n_aligned, sub, cores) or 128
    prefix_out = _swish_2d(
        x_flat[:n_aligned].reshape(n_aligned // w, w), vmem_capacity, cores
    ).reshape(-1)
    # TODO(synk): fold the tail into the kernel as a masked final block (scalar
    # prefetch of n) to avoid this concatenate copy for the ragged case.
    return jnp.concatenate([prefix_out, tail_out]).reshape(orig_shape)


if __name__ == "__main__":
    key = jax.random.PRNGKey(0)
    # NCHW input, consistent with typical conv-net usage of this activation.
    x = jax.random.normal(key, (2, 4, 16, 16), dtype=jnp.float32)

    y = swish(x)
    jax.block_until_ready(y)

    # Reference check in plain JAX (tanh-form sigmoid is exact; tight tolerance).
    y_ref = x * jax.nn.sigmoid(x)
    assert y.shape == x.shape and y.dtype == x.dtype
    assert jnp.allclose(y, y_ref, atol=1e-5, rtol=1e-5), float(
        jnp.max(jnp.abs(y - y_ref))
    )

    print("KERNEL_OK")
</pallas_src>

<mosaic_0001>
module attributes {stable_mosaic.version = 11 : i64} {
  func.func @_swish_kernel(%arg0: i32, %arg1: memref<8x256xf32, #tpu.memory_space<vmem>>, %arg2: memref<8x256xf32, #tpu.memory_space<vmem>>) attributes {dimension_semantics = [#tpu.dimension_semantics<parallel>], iteration_bounds = array<i64: 1>, scalar_prefetch = 0 : i64, scratch_operands = 0 : i64, tpu.core_type = #tpu.core_type<tc>, window_params = [{transform_indices = @transform_0, window_bounds = array<i64: 8, 256>}, {transform_indices = @transform_1, window_bounds = array<i64: 8, 256>}]} {
    %c0 = arith.constant 0 : index
    %c0_0 = arith.constant 0 : index
    %0 = vector.load %arg1[%c0, %c0_0] : memref<8x256xf32, #tpu.memory_space<vmem>>, vector<8x256xf32>
    %cst = arith.constant 5.000000e-01 : f32
    %1 = vector.broadcast %cst : f32 to vector<8x256xf32>
    %2 = arith.mulf %1, %0 : vector<8x256xf32>
    %cst_1 = arith.constant 5.000000e-01 : f32
    %3 = vector.broadcast %cst_1 : f32 to vector<8x256xf32>
    %4 = arith.mulf %3, %0 : vector<8x256xf32>
    %5 = math.tanh %4 : vector<8x256xf32>
    %cst_2 = arith.constant 1.000000e+00 : f32
    %6 = vector.broadcast %cst_2 : f32 to vector<8x256xf32>
    %7 = arith.addf %6, %5 : vector<8x256xf32>
    %8 = arith.mulf %2, %7 : vector<8x256xf32>
    %c0_3 = arith.constant 0 : index
    %c0_4 = arith.constant 0 : index
    %9 = vector.load %arg2[%c0_3, %c0_4] : memref<8x256xf32, #tpu.memory_space<vmem>>, vector<8x256xf32>
    tpu.vector_store %arg2[%c0_3, %c0_4], %8 {strides = array<i32>} : memref<8x256xf32, #tpu.memory_space<vmem>>, vector<8x256xf32>,
    return
  }
  func.func @transform_0(%arg0: i32) -> (i32, i32) {
    %c0_i32 = arith.constant 0 : i32
    %c0_i32_0 = arith.constant 0 : i32
    return %arg0, %c0_i32 : i32, i32
  }
  func.func @transform_1(%arg0: i32) -> (i32, i32) {
    %c0_i32 = arith.constant 0 : i32
    %c0_i32_0 = arith.constant 0 : i32
    return %arg0, %c0_i32 : i32, i32
  }
}

</mosaic_0001>

<bundles_post_ra>
// kernel: tpu_custom_call.1
= control target key start
LH: loop header
LB: loop body
LE: loop exit
PB: predicated region body
PF: predicated region fallthrough
CT: control target
= control target key end

     0   :  { %6 = vsyncpa [#allocation3], 0  ;;  %s116_s0 = inlined_call_operand.hbm [shape: f32[8,256], index: 0, kind: input, shape index: {}]   ;;  %s117_s1 = inlined_call_operand.hbm [shape: f32[8,256], index: 1, kind: output, shape index: {}]  }
   0x1   :  { %7 = vsyncpa [#allocation4], 0  ;;  %s98_s6 = smov [#allocation2]  }
   0x2   :  { %s14_s7 = sshll.u32 %s98_s6, 4  ;;  %s15_s7 = int_to_ptr.vmem [resolvable:$true] %s14_s7 }
   0x3   :  { %s62_s8 = scalar_lea.vmem %s15_s7, 256  ;;  %p67_p1 = scmp.lt.s32.totalorder %s15_s7, %s15_s7 }
   0x4   :  { %p63_p0 = scmp.ne.s32.totalorder %s15_s7, %s62_s8  ;;  %p68_p2 = scmp.lt.s32.totalorder %s62_s8, %s62_s8 }
   0x6   :  { %p69_p3 = por %p68_p2, %p67_p1 }
   0x8   :  { %p70_p4 = pnand %p69_p3, %p63_p0 }
   0xa   :  { %73 = shalt.err (!%p70_p4)
}
   0xb   :  { %17 = dma.hbm_to_vmem [thread:$0]  %s116_s0, 256, %s15_s7, [#allocation3]  }
   0xc   :  { %94 = dma.done.wait [#allocation3], 256  }
   0xd   :  { %95 = vsyncadd [#allocation3], 4294967040  ;;  %v21_v0 = vld [vmem:[#allocation2] sm:$0xff]  ;;  %v22_v1 = vld [vmem:[#allocation2 + $0x8] sm:$0xff]  ;;  %s99_s11 = smov [#allocation5]  }
   0xe   :  { %v23_v2 = vmul.f32 0.5, %v21_v0  ;;  %v24_v3 = vmul.f32 0.5, %v22_v1  ;;  %s39_s12 = sshll.u32 %s99_s11, 4  ;;  %s40_s12 = int_to_ptr.vmem [resolvable:$true] %s39_s12 }
   0xf   :  { %s74_s0 = scalar_lea.vmem %s40_s12, 256  ;;  %p79_p6 = scmp.lt.s32.totalorder %s40_s12, %s40_s12 }
  0x10   :  { %50 = vtanh.f32 %v23_v2  ;;  %p75_p5 = scmp.ne.s32.totalorder %s40_s12, %s74_s0  ;;  %p80_p7 = scmp.lt.s32.totalorder %s74_s0, %s74_s0 }
  0x11   :  { %52 = vtanh.f32 %v24_v3 }
  0x12   :  { %p81_p8 = por %p80_p7, %p79_p6 }
  0x14   :  { %p82_p9 = pnand %p81_p8, %p75_p5 }
  0x1d   :  { %v51_v4 = vpop.eup %50 }
  0x1e   :  { %v53_v5 = vpop.eup %52  ;;  %v27_v6 = vadd.f32 1.0, %v51_v4 }
  0x1f   :  { %v28_v7 = vadd.f32 1.0, %v53_v5 }
  0x20   :  { %v29_v8 = vmul.f32 %v27_v6, %v23_v2 }
  0x21   :  { %v30_v9 = vmul.f32 %v28_v7, %v24_v3 }
  0x22   :  { %31 = vst [vmem:[#allocation5] sm:$0xff] %v29_v8 }
  0x23   :  { %32 = vst [vmem:[#allocation5 + $0x8] sm:$0xff] %v30_v9 }
  0x24   :  { %85 = shalt.err (!%p82_p9)
}
  0x25   :  { %42 = dma.vmem_to_hbm [thread:$0]  %s40_s12, 256, %s117_s1, [#allocation4]  }
  0x26   :  { %96 = dma.done.wait [#allocation4], 256  }
  0x27   :  { %97 = vsyncadd [#allocation4], 4294967040 }
  0x28   :  { %46 = vsyncpa [#allocation3], 1 }
  0x29   :  { %47 = vsyncpa [#allocation4], 1 }

</bundles_post_ra>
